<compile_context>
chip_gen: v5e
topology: v5e:2x2
jax: 0.10.0
libtpu: 0.0.40
codegen_flags: <defaults>
</compile_context>

<pallas_src>
import jax
import jax.numpy as jnp
from jax.experimental import pallas as pl
from jax.experimental.pallas import tpu as pltpu

LANE = 128  # TPU lane width: feature dims padded to multiples of this


def _round_up(n, m):
    return (n + m - 1) // m * m


def _pad2(a, rows, cols):
    return jnp.pad(a, ((0, rows - a.shape[0]), (0, cols - a.shape[1])))


# ----------------------------------------------------------------- kernel ---
def vega_kernel(x_ref,
                we1_ref, be1_ref,       # encoder layer 1 (G -> H)
                wmid_ref, bmid_ref,     # folded enc-2 + dec-1 (H -> H)
                wd2_ref, bd2_ref,       # decoder layer 2 (H -> G)
                out_ref):
    wdt = we1_ref.dtype                          # bf16 MXU input dtype
    x = x_ref[...]
    if x.dtype != wdt:
        x = x.astype(wdt)

    # encoder layer 1 + ReLU
    h1 = jnp.dot(x, we1_ref[...], preferred_element_type=jnp.float32)
    h1 = jnp.maximum(h1 + be1_ref[...], 0.0)

    # folded (encoder layer 2 @ decoder layer 1) + ReLU
    h2 = jnp.dot(h1.astype(wdt), wmid_ref[...],
                 preferred_element_type=jnp.float32)
    h2 = jnp.maximum(h2 + bmid_ref[...], 0.0)

    # decoder layer 2
    out = jnp.dot(h2.astype(wdt), wd2_ref[...],
                  preferred_element_type=jnp.float32) + bd2_ref[...]

    out_ref[...] = out.astype(out_ref.dtype)


# ---------------------------------------------------------------- wrappers --
def _num_tensorcores():
    """Best-effort TensorCore-per-chip count (2 on v7x, else 1)."""
    try:
        kind = str(jax.devices()[0].device_kind).lower()
        return 2 if ("v7" in kind or "7x" in kind) else 1
    except Exception:
        return 1


def _vmem_capacity_bytes():
    try:
        return int(pltpu.get_tpu_info().vmem_capacity_bytes)
    except Exception:
        return 64 << 20  # conservative (v7x per-TC)


def choose_batch_tile(batch, num_tc=None, max_tile=1024):
    """At least `num_tc` grid steps (feed every TensorCore), <= max_tile rows,
    sublane(8)-aligned.  For B=256 this is 1 step on v5e/v6e, 2 on v7x."""
    if num_tc is None:
        num_tc = _num_tensorcores()
    steps = max(num_tc, -(-batch // max_tile))
    return _round_up(-(-batch // steps), 8)


def prepare_params(params, weight_dtype=jnp.bfloat16):
    """One-time conversion of PyTorch-layout params -> kernel layout.

    * transposes nn.Linear (out,in) -> (in,out),
    * folds encoder layer-2 with decoder layer-1 in f32 (no nonlinearity
      between them), dropping the latent dim from the kernel entirely,
    * zero-pads feature dims to multiples of 128 (lane-dense tiles/stores),
    * casts weights to `weight_dtype` (biases stay f32, added post-accum).
    Call once at model-load time, not per forward call.
    """
    H, G = params["we1"].shape
    Gp, Hp = _round_up(G, LANE), _round_up(H, LANE)

    f32 = jnp.float32
    we1_t = params["we1"].T.astype(f32)                      # (G, H)
    wd2_t = params["wd2"].T.astype(f32)                      # (H, G)
    # fold: z = h1 @ we2^T + be2 ; h2_pre = z @ wd1^T + bd1
    w_mid = params["we2"].T.astype(f32) @ params["wd1"].T.astype(f32)   # (H, H)
    b_mid = params["be2"].astype(f32) @ params["wd1"].T.astype(f32) \
        + params["bd1"].astype(f32)                                      # (H,)

    def w(a, rows, cols):
        return _pad2(a, rows, cols).astype(weight_dtype)

    def b(a, cols):
        return _pad2(a.astype(f32).reshape(1, -1), 1, cols)

    return dict(
        we1=w(we1_t, Gp, Hp),  be1=b(params["be1"], Hp),
        wmid=w(w_mid, Hp, Hp), bmid=b(b_mid, Hp),
        wd2=w(wd2_t, Hp, Gp),  bd2=b(params["bd2"], Gp),
    )


def prepare_input(x, kp, batch_tile, io_dtype=jnp.bfloat16):
    """One-time pad (rows -> multiple of batch_tile, cols -> Gp) and bf16 cast.
    Done at data-load time so the per-call path has no pad/copy ops."""
    B, G = x.shape
    Gp = kp["we1"].shape[0]
    Bp = _round_up(B, batch_tile)
    xp = jnp.pad(x, ((0, Bp - B), (0, Gp - G))) if (Bp != B or Gp != G) else x
    return xp.astype(io_dtype)


def vega_forward(xp, kp, *, batch_tile):
    """xp: (Bp, Gp) bf16, already padded (prepare_input).  Returns (Bp, Gp)
    bf16; caller slices back to (B, G) outside the hot path."""
    Bp, Gp = xp.shape
    Hp = kp["we1"].shape[1]
    bt = batch_tile
    assert Bp % bt == 0 and Gp == kp["we1"].shape[0]

    grid = (Bp // bt,)

    # Weights/biases: one resident, untiled copy in VMEM (no double-buffer,
    # no per-step re-DMA since the data never changes across grid steps).
    resident = pl.BlockSpec(memory_space=pltpu.MemorySpace.VMEM)
    weight_names = ("we1", "be1", "wmid", "bmid", "wd2", "bd2")

    weight_bytes = sum(int(kp[k].size) * kp[k].dtype.itemsize
                       for k in weight_names)
    io_bytes = 2 * 2 * bt * Gp * xp.dtype.itemsize     # double-buffered x/out
    act_bytes = bt * (2 * Hp + Gp) * 4                 # f32 intermediates
    cap = _vmem_capacity_bytes()
    vmem_limit = min(weight_bytes + io_bytes + act_bytes + (16 << 20),
                     cap - (8 << 20))

    flops = 2 * Bp * (Gp * Hp + Hp * Hp + Hp * Gp)
    bytes_accessed = (xp.size * xp.dtype.itemsize + weight_bytes
                      + Bp * Gp * xp.dtype.itemsize)

    return pl.pallas_call(
        vega_kernel,
        out_shape=jax.ShapeDtypeStruct((Bp, Gp), xp.dtype),
        grid_spec=pl.GridSpec(
            grid=grid,
            in_specs=[pl.BlockSpec((bt, Gp), lambda i: (i, 0))]   # x tile
                     + [resident] * len(weight_names),            # weights/bias
            out_specs=pl.BlockSpec((bt, Gp), lambda i: (i, 0)),
        ),
        compiler_params=pltpu.CompilerParams(
            dimension_semantics=("parallel",),
            vmem_limit_bytes=int(vmem_limit)),
        cost_estimate=pl.CostEstimate(
            flops=int(flops), transcendentals=0,
            bytes_accessed=int(bytes_accessed)),
    )(xp, *(kp[k] for k in weight_names))


# ------------------------------------------------------------------ helpers -
def init_params(key, genes, hidden, latent):
    """Deterministic synthetic parameters in PyTorch nn.Linear layout (out, in)."""
    ks = jax.random.split(key, 8)

    def lin(kw, kb, out_dim, in_dim):
        bound = 1.0 / jnp.sqrt(in_dim)
        w = jax.random.uniform(kw, (out_dim, in_dim), jnp.float32, -bound, bound)
        b = jax.random.uniform(kb, (out_dim,), jnp.float32, -bound, bound)
        return w, b

    we1, be1 = lin(ks[0], ks[1], hidden, genes)
    we2, be2 = lin(ks[2], ks[3], latent, hidden)
    wd1, bd1 = lin(ks[4], ks[5], hidden, latent)
    wd2, bd2 = lin(ks[6], ks[7], genes, hidden)
    return dict(we1=we1, be1=be1, we2=we2, be2=be2,
                wd1=wd1, bd1=bd1, wd2=wd2, bd2=bd2)


def vega_reference(x, p):
    """Pure-JAX f32 reference mirroring the PyTorch forward (4 linears)."""
    h1 = jnp.maximum(x @ p["we1"].T + p["be1"], 0.0)
    z = h1 @ p["we2"].T + p["be2"]
    h2 = jnp.maximum(z @ p["wd1"].T + p["bd1"], 0.0)
    return h2 @ p["wd2"].T + p["bd2"]


if __name__ == "__main__":
    key = jax.random.PRNGKey(0)
    k_x, k_p = jax.random.split(key)

    # Small logical shapes consistent with a VEGA autoencoder.
    B, G, H, L = 256, 64, 32, 16      # batch, genes, hidden, latent
    x = jax.random.normal(k_x, (B, G), jnp.float32)
    params = init_params(k_p, G, H, L)

    # One-time preparation (outside the per-call hot path): fold + pad + bf16.
    kparams = prepare_params(params)
    bt = choose_batch_tile(B)                 # 1 step on v5e/v6e, 2 on v7x
    xp = prepare_input(x, kparams, bt)        # pad + bf16 cast, done once

    out_p = vega_forward(xp, kparams, batch_tile=bt)
    out_p = jax.block_until_ready(out_p)
    out = out_p[:B, :G].astype(jnp.float32)   # un-pad once, outside hot path

    ref = vega_reference(x, params)
    assert out.shape == (B, G)
    # bf16 I/O + bf16 weights on the MXU with f32 accumulation: ~1% deviation
    # vs the f32 reference is expected and bounded.
    assert jnp.allclose(out, ref, atol=3e-2, rtol=3e-2), (
        "mismatch vs reference, max abs err = "
        f"{jnp.max(jnp.abs(out - ref)):.3e}")

    print("KERNEL_OK")
</pallas_src>

<mosaic_0001>
module attributes {stable_mosaic.version = 11 : i64} {
  func.func @vega_kernel(%arg0: i32, %arg1: memref<256x128xbf16, #tpu.memory_space<vmem>>, %arg2: memref<128x128xbf16, #tpu.memory_space<vmem>>, %arg3: memref<1x128xf32, #tpu.memory_space<vmem>>, %arg4: memref<128x128xbf16, #tpu.memory_space<vmem>>, %arg5: memref<1x128xf32, #tpu.memory_space<vmem>>, %arg6: memref<128x128xbf16, #tpu.memory_space<vmem>>, %arg7: memref<1x128xf32, #tpu.memory_space<vmem>>, %arg8: memref<256x128xbf16, #tpu.memory_space<vmem>>) attributes {dimension_semantics = [#tpu.dimension_semantics<parallel>], iteration_bounds = array<i64: 1>, scalar_prefetch = 0 : i64, scratch_operands = 0 : i64, tpu.core_type = #tpu.core_type<tc>, window_params = [{transform_indices = @transform_0, window_bounds = array<i64: 256, 128>}, {pipeline_mode = #tpu.pipeline_mode<synchronous>, transform_indices = @transform_1, window_bounds = array<i64: 128, 128>}, {pipeline_mode = #tpu.pipeline_mode<synchronous>, transform_indices = @transform_2, window_bounds = array<i64: 1, 128>}, {pipeline_mode = #tpu.pipeline_mode<synchronous>, transform_indices = @transform_3, window_bounds = array<i64: 128, 128>}, {pipeline_mode = #tpu.pipeline_mode<synchronous>, transform_indices = @transform_4, window_bounds = array<i64: 1, 128>}, {pipeline_mode = #tpu.pipeline_mode<synchronous>, transform_indices = @transform_5, window_bounds = array<i64: 128, 128>}, {pipeline_mode = #tpu.pipeline_mode<synchronous>, transform_indices = @transform_6, window_bounds = array<i64: 1, 128>}, {transform_indices = @transform_7, window_bounds = array<i64: 256, 128>}]} {
    %c0 = arith.constant 0 : index
    %c0_0 = arith.constant 0 : index
    %0 = vector.load %arg1[%c0, %c0_0] : memref<256x128xbf16, #tpu.memory_space<vmem>>, vector<256x128xbf16>
    %c0_1 = arith.constant 0 : index
    %c0_2 = arith.constant 0 : index
    %1 = vector.load %arg2[%c0_1, %c0_2] : memref<128x128xbf16, #tpu.memory_space<vmem>>, vector<128x128xbf16>
    %cst = arith.constant dense<0.000000e+00> : vector<256x128xf32>
    %2 = tpu.matmul %0, %1, %cst {dimension_numbers = #tpu.dot_dimension_numbers<[1], [0], [0], [1], [0, 0, 1, 1], [], []>} : vector<256x128xbf16>, vector<128x128xbf16>, vector<256x128xf32> -> vector<256x128xf32>
    %c0_3 = arith.constant 0 : index
    %c0_4 = arith.constant 0 : index
    %3 = vector.load %arg3[%c0_3, %c0_4] : memref<1x128xf32, #tpu.memory_space<vmem>>, vector<1x128xf32>
    %4 = vector.broadcast %3 : vector<1x128xf32> to vector<256x128xf32>
    %5 = arith.addf %2, %4 : vector<256x128xf32>
    %cst_5 = arith.constant 0.000000e+00 : f32
    %6 = vector.broadcast %cst_5 : f32 to vector<256x128xf32>
    %7 = arith.maximumf %5, %6 : vector<256x128xf32>
    %8 = arith.truncf %7 : vector<256x128xf32> to vector<256x128xbf16>
    %c0_6 = arith.constant 0 : index
    %c0_7 = arith.constant 0 : index
    %9 = vector.load %arg4[%c0_6, %c0_7] : memref<128x128xbf16, #tpu.memory_space<vmem>>, vector<128x128xbf16>
    %cst_8 = arith.constant dense<0.000000e+00> : vector<256x128xf32>
    %10 = tpu.matmul %8, %9, %cst_8 {dimension_numbers = #tpu.dot_dimension_numbers<[1], [0], [0], [1], [0, 0, 1, 1], [], []>} : vector<256x128xbf16>, vector<128x128xbf16>, vector<256x128xf32> -> vector<256x128xf32>
    %c0_9 = arith.constant 0 : index
    %c0_10 = arith.constant 0 : index
    %11 = vector.load %arg5[%c0_9, %c0_10] : memref<1x128xf32, #tpu.memory_space<vmem>>, vector<1x128xf32>
    %12 = vector.broadcast %11 : vector<1x128xf32> to vector<256x128xf32>
    %13 = arith.addf %10, %12 : vector<256x128xf32>
    %cst_11 = arith.constant 0.000000e+00 : f32
    %14 = vector.broadcast %cst_11 : f32 to vector<256x128xf32>
    %15 = arith.maximumf %13, %14 : vector<256x128xf32>
    %16 = arith.truncf %15 : vector<256x128xf32> to vector<256x128xbf16>
    %c0_12 = arith.constant 0 : index
    %c0_13 = arith.constant 0 : index
    %17 = vector.load %arg6[%c0_12, %c0_13] : memref<128x128xbf16, #tpu.memory_space<vmem>>, vector<128x128xbf16>
    %cst_14 = arith.constant dense<0.000000e+00> : vector<256x128xf32>
    %18 = tpu.matmul %16, %17, %cst_14 {dimension_numbers = #tpu.dot_dimension_numbers<[1], [0], [0], [1], [0, 0, 1, 1], [], []>} : vector<256x128xbf16>, vector<128x128xbf16>, vector<256x128xf32> -> vector<256x128xf32>
    %c0_15 = arith.constant 0 : index
    %c0_16 = arith.constant 0 : index
    %19 = vector.load %arg7[%c0_15, %c0_16] : memref<1x128xf32, #tpu.memory_space<vmem>>, vector<1x128xf32>
    %20 = vector.broadcast %19 : vector<1x128xf32> to vector<256x128xf32>
    %21 = arith.addf %18, %20 : vector<256x128xf32>
    %22 = arith.truncf %21 : vector<256x128xf32> to vector<256x128xbf16>
    %c0_17 = arith.constant 0 : index
    %c0_18 = arith.constant 0 : index
    %23 = vector.load %arg8[%c0_17, %c0_18] : memref<256x128xbf16, #tpu.memory_space<vmem>>, vector<256x128xbf16>
    tpu.vector_store %arg8[%c0_17, %c0_18], %22 {strides = array<i32>} : memref<256x128xbf16, #tpu.memory_space<vmem>>, vector<256x128xbf16>,
    return
  }
  func.func @transform_0(%arg0: i32) -> (i32, i32) {
    %c0_i32 = arith.constant 0 : i32
    %c0_i32_0 = arith.constant 0 : i32
    return %arg0, %c0_i32 : i32, i32
  }
  func.func @transform_1(%arg0: i32) -> (i32, i32) {
    %c0_i32 = arith.constant 0 : i32
    %c0_i32_0 = arith.constant 0 : i32
    %c0_i32_1 = arith.constant 0 : i32
    return %c0_i32, %c0_i32_0 : i32, i32
  }
  func.func @transform_2(%arg0: i32) -> (i32, i32) {
    %c0_i32 = arith.constant 0 : i32
    %c0_i32_0 = arith.constant 0 : i32
    %c0_i32_1 = arith.constant 0 : i32
    return %c0_i32, %c0_i32_0 : i32, i32
  }
  func.func @transform_3(%arg0: i32) -> (i32, i32) {
    %c0_i32 = arith.constant 0 : i32
    %c0_i32_0 = arith.constant 0 : i32
    %c0_i32_1 = arith.constant 0 : i32
    return %c0_i32, %c0_i32_0 : i32, i32
  }
  func.func @transform_4(%arg0: i32) -> (i32, i32) {
    %c0_i32 = arith.constant 0 : i32
    %c0_i32_0 = arith.constant 0 : i32
    %c0_i32_1 = arith.constant 0 : i32
    return %c0_i32, %c0_i32_0 : i32, i32
  }
  func.func @transform_5(%arg0: i32) -> (i32, i32) {
    %c0_i32 = arith.constant 0 : i32
    %c0_i32_0 = arith.constant 0 : i32
    %c0_i32_1 = arith.constant 0 : i32
    return %c0_i32, %c0_i32_0 : i32, i32
  }
  func.func @transform_6(%arg0: i32) -> (i32, i32) {
    %c0_i32 = arith.constant 0 : i32
    %c0_i32_0 = arith.constant 0 : i32
    %c0_i32_1 = arith.constant 0 : i32
    return %c0_i32, %c0_i32_0 : i32, i32
  }
  func.func @transform_7(%arg0: i32) -> (i32, i32) {
    %c0_i32 = arith.constant 0 : i32
    %c0_i32_0 = arith.constant 0 : i32
    return %arg0, %c0_i32 : i32, i32
  }
}

</mosaic_0001>

<bundles_post_ra>
// kernel: tpu_custom_call.1
= control target key start
LH: loop header
LB: loop body
LE: loop exit
PB: predicated region body
PF: predicated region fallthrough
CT: control target
= control target key end

     0   :  { %12 = vsyncpa [#allocation3], 0  ;;  %s1515_s0 = inlined_call_operand.hbm [shape: bf16[256,128], index: 0, kind: input, shape index: {}]   ;;  %s1516_s1 = inlined_call_operand.hbm [shape: bf16[128,128], index: 1, kind: input, shape index: {}]   ;;  %s1517_s2 = inlined_call_operand.vmem [shape: f32[1,128], index: 2, kind: input, shape index: {}]   ;;  %s1518_s3 = inlined_call_operand.hbm [shape: bf16[128,128], index: 3, kind: input, shape index: {}]   ;;  %s1519_s4 = inlined_call_operand.vmem [shape: f32[1,128], index: 4, kind: input, shape index: {}]   ;;  %s1520_s5 = inlined_call_operand.hbm [shape: bf16[128,128], index: 5, kind: input, shape index: {}]   ;;  %s1521_s6 = inlined_call_operand.vmem [shape: f32[1,128], index: 6, kind: input, shape index: {}]   ;;  %s1522_s7 = inlined_call_operand.hbm [shape: bf16[256,128], index: 7, kind: output, shape index: {}]  }
   0x1   :  { %13 = vsyncpa [#allocation6], 0 }
   0x2   :  { %14 = vsyncpa [#allocation9], 0 }
   0x3   :  { %15 = vsyncpa [#allocation4], 0  ;;  %s33_s26 = sshll.u32 %s1516_s1, 4  ;;  %s1327_s27 = smov [#allocation5]   ;;  %s34_s26 = int_to_ptr.hbm [resolvable:$true] %s33_s26 }
   0x4   :  { %s35_s28 = sshll.u32 %s1327_s27, 4  ;;  %s20_s8 = sshll.u32 %s1515_s0, 4  ;;  %s36_s28 = int_to_ptr.vmem [resolvable:$true] %s35_s28  ;;  %s21_s8 = int_to_ptr.hbm [resolvable:$true] %s20_s8 }
   0x5   :  { %s1328_s9 = smov 64   ;;  %s1329_s10 = smov 4  }
   0x6   :  { %41 = dma.hbm_to_vmem [thread:$0]  %s34_s26, 1024, %s36_s28, [#allocation6], %s1328_s9, %s1328_s9, %s1329_s10  }
   0x7   :  { %s1330_s11 = smov [#allocation2]   ;;  %s48_s1 = sshll.u32 %s1518_s3, 4  ;;  %s49_s1 = int_to_ptr.hbm [resolvable:$true] %s48_s1 }
   0x8   :  { %s22_s12 = sshll.u32 %s1330_s11, 4  ;;  %s63_s16 = sshll.u32 %s1520_s5, 4  ;;  %s23_s12 = int_to_ptr.vmem [resolvable:$true] %s22_s12  ;;  %s64_s16 = int_to_ptr.hbm [resolvable:$true] %s63_s16 }
   0x9   :  { %28 = dma.hbm_to_vmem [thread:$0]  %s21_s8, 2048, %s23_s12, [#allocation3], %s1328_s9, %s1328_s9, %s1329_s10  }
   0xa   :  { %s1331_s17 = smov [#allocation7]   ;;  %s1332_s19 = smov [#allocation8]  }
   0xb   :  { %s50_s18 = sshll.u32 %s1331_s17, 4  ;;  %s65_s3 = sshll.u32 %s1332_s19, 4  ;;  %s51_s18 = int_to_ptr.vmem [resolvable:$true] %s50_s18  ;;  %s66_s3 = int_to_ptr.vmem [resolvable:$true] %s65_s3 }
   0xc   :  { %56 = dma.hbm_to_vmem [thread:$0]  %s49_s1, 1024, %s51_s18, [#allocation6], %s1328_s9, %s1328_s9, %s1329_s10  }
   0xd   :  { %71 = dma.hbm_to_vmem [thread:$0]  %s64_s16, 1024, %s66_s3, [#allocation9], %s1328_s9, %s1328_s9, %s1329_s10  }
   0xe   :  { %1319 = dma.done.wait [#allocation3], 2048  }
   0xf   :  { %1320 = vsyncadd [#allocation3], 4294965248 }
  0x10   :  { %1321 = dma.done.wait [#allocation6], 2048  }
  0x11   :  { %1322 = vsyncadd [#allocation6], 4294965248 }
  0x12   :  { %1323 = dma.done.wait [#allocation9], 1024  }
  0x13   :  { %1324 = vsyncadd [#allocation9], 4294966272  ;;  %v1053_v0 = vld [vmem:[#allocation5 + $0x38] sm:$0xff]  ;;  %v1052_v1 = vld [vmem:[#allocation5 + $0x30] sm:$0xff]  ;;  %s855_s26 = sshll.u32 %s1522_s7, 4  ;;  %s856_s26 = int_to_ptr.hbm [resolvable:$true] %s855_s26 }
  0x14   :  { %286 = vmatpush.bf16.msra.mxu0 %v1053_v0  ;;  %1165 = vmatpush.bf16.msra.mxu3 %v1053_v0  ;;  %v1051_v2 = vld [vmem:[#allocation5 + $0x28] sm:$0xff]  ;;  %v1050_v3 = vld [vmem:[#allocation5 + $0x20] sm:$0xff]  ;;  %v1049_v4 = vld [vmem:[#allocation5 + $0x18] sm:$0xff] }
  0x15   :  { %v1048_v5 = vld [vmem:[#allocation5 + $0x10] sm:$0xff]  ;;  %v1047_v6 = vld [vmem:[#allocation5 + $0x8] sm:$0xff]  ;;  %v1046_v7 = vld [vmem:[#allocation5] sm:$0xff] }
  0x16   :  { %v1030_v8 = vld [vmem:[#allocation2] sm:$0xff]  ;;  %v1031_v9 = vld [vmem:[#allocation2 + $0x8] sm:$0xff]  ;;  %v1032_v10 = vld [vmem:[#allocation2 + $0x10] sm:$0xff] }
  0x17   :  { %v1033_v11 = vld [vmem:[#allocation2 + $0x18] sm:$0xff]  ;;  %v1042_v12 = vld [vmem:[#allocation2 + $0x60] sm:$0xff]  ;;  %v1043_v14 = vld [vmem:[#allocation2 + $0x68] sm:$0xff] }
  0x18   :  { %287 = vmatpush.bf16.msra.mxu0 %v1052_v1  ;;  %1166 = vmatpush.bf16.msra.mxu3 %v1052_v1  ;;  %v1034_v13 = vld [vmem:[#allocation2 + $0x20] sm:$0xff]  ;;  %v1061_v15 = vld [vmem:[#allocation7 + $0x38] sm:$0xff]  ;;  %v1035_v16 = vld [vmem:[#allocation2 + $0x28] sm:$0xff] }
  0x19   :  { %491 = vmatpush.bf16.msra.mxu1 %v1061_v15  ;;  %v1060_v17 = vld [vmem:[#allocation7 + $0x30] sm:$0xff]  ;;  %v1059_v19 = vld [vmem:[#allocation7 + $0x28] sm:$0xff]  ;;  %v1058_v20 = vld [vmem:[#allocation7 + $0x20] sm:$0xff] }
  0x1a   :  { %v1044_v18 = vld [vmem:[#allocation2 + $0x70] sm:$0xff]  ;;  %v1057_v21 = vld [vmem:[#allocation7 + $0x18] sm:$0xff]  ;;  %v1055_v24 = vld [vmem:[#allocation7 + $0x8] sm:$0xff] }
  0x1b   :  { %v1036_v22 = vld [vmem:[#allocation2 + $0x30] sm:$0xff]  ;;  %v1054_v25 = vld [vmem:[#allocation7] sm:$0xff]  ;;  %v1045_v26 = vld [vmem:[#allocation2 + $0x78] sm:$0xff] }
  0x1c   :  { %288 = vmatpush.bf16.msra.mxu0 %v1051_v2  ;;  %1167 = vmatpush.bf16.msra.mxu3 %v1051_v2  ;;  %v1056_v23 = vld [vmem:[#allocation7 + $0x10] sm:$0xff]  ;;  %v1037_v27 = vld [vmem:[#allocation2 + $0x38] sm:$0xff]  ;;  %v1038_v28 = vld [vmem:[#allocation2 + $0x40] sm:$0xff] }
  0x1d   :  { %492 = vmatpush.bf16.msra.mxu1 %v1060_v17  ;;  %v1401_v30 = vld [vmem:[%s1517_s2] ss:$0 sm:$0xff]  ;;  %v1039_v37 = vld [vmem:[#allocation2 + $0x48] sm:$0xff]  ;;  %v1040_v45 = vld [vmem:[#allocation2 + $0x50] sm:$0xff] }
  0x1e   :  { %v1041_v53 = vld [vmem:[#allocation2 + $0x58] sm:$0xff] }
  0x20   :  { %289 = vmatpush.bf16.msra.mxu0 %v1050_v3  ;;  %1168 = vmatpush.bf16.msra.mxu3 %v1050_v3 }
  0x21   :  { %493 = vmatpush.bf16.msra.mxu1 %v1059_v19 }
  0x24   :  { %290 = vmatpush.bf16.msra.mxu0 %v1049_v4  ;;  %1169 = vmatpush.bf16.msra.mxu3 %v1049_v4 }
  0x25   :  { %494 = vmatpush.bf16.msra.mxu1 %v1058_v20 }
  0x28   :  { %291 = vmatpush.bf16.msra.mxu0 %v1048_v5  ;;  %1170 = vmatpush.bf16.msra.mxu3 %v1048_v5 }
  0x29   :  { %495 = vmatpush.bf16.msra.mxu1 %v1057_v21 }
  0x2c   :  { %292 = vmatpush.bf16.msra.mxu0 %v1047_v6  ;;  %1171 = vmatpush.bf16.msra.mxu3 %v1047_v6 }
  0x2d   :  { %496 = vmatpush.bf16.msra.mxu1 %v1056_v23 }
  0x30   :  { %293 = vmatpush.bf16.msra.mxu0 %v1046_v7  ;;  %1172 = vmatpush.bf16.msra.mxu3 %v1046_v7 }
  0x31   :  { %497 = vmatpush.bf16.msra.mxu1 %v1055_v24 }
  0x33   :  { %294 = vmatmul.bf16.vlgmr.msra.gmra.mxu0 %v1030_v8  ;;  %354 = vmatmul.bf16.vlgmr.msra.gmra.mxu3 %v1042_v12 }
  0x34   :  { %1173 = vmatpush.bf16.msrb.mxu3 %v1061_v15 }
  0x35   :  { %498 = vmatpush.bf16.msra.mxu1 %v1054_v25 }
  0x38   :  { %1174 = vmatpush.bf16.msrb.mxu3 %v1060_v17 }
  0x3c   :  { %1175 = vmatpush.bf16.msrb.mxu3 %v1059_v19 }
  0x40   :  { %1176 = vmatpush.bf16.msrb.mxu3 %v1058_v20 }
  0x43   :  { %299 = vmatmul.bf16.gmra.mxu0 %v1031_v9  ;;  %359 = vmatmul.bf16.gmra.mxu3 %v1043_v14 }
  0x44   :  { %1177 = vmatpush.bf16.msrb.mxu3 %v1057_v21 }
  0x48   :  { %1178 = vmatpush.bf16.msrb.mxu3 %v1056_v23 }
  0x4c   :  { %1179 = vmatpush.bf16.msrb.mxu3 %v1055_v24 }
  0x50   :  { %1180 = vmatpush.bf16.msrb.mxu3 %v1054_v25  ;;  %v1068_v25 = vld [vmem:[#allocation8 + $0x30] sm:$0xff] }
  0x53   :  { %304 = vmatmul.bf16.gmra.mxu0 %v1032_v10  ;;  %364 = vmatmul.bf16.gmra.mxu3 %v1044_v18  ;;  %v1069_v18 = vld [vmem:[#allocation8 + $0x38] sm:$0xff] }
  0x54   :  { %696 = vmatpush.bf16.msra.mxu2 %v1069_v18  ;;  %1181 = vmatpush.bf16.msra.mxu3 %v1069_v18 }
  0x58   :  { %697 = vmatpush.bf16.msra.mxu2 %v1068_v25  ;;  %1182 = vmatpush.bf16.msra.mxu3 %v1068_v25 }
  0x63   :  { %309 = vmatmul.bf16.gmra.mxu0 %v1033_v11  ;;  %369 = vmatmul.bf16.gmra.mxu3 %v1045_v26 }
  0x73   :  { %314 = vmatmul.bf16.gmra.mxu0 %v1034_v13 }
  0x83   :  { %319 = vmatmul.bf16.gmra.mxu0 %v1035_v16 }
  0x93   :  { %324 = vmatmul.bf16.gmra.mxu0 %v1036_v22 }
  0xa3   :  { %329 = vmatmul.bf16.gmra.mxu0 %v1037_v27 }
  0xb0   :  { %v295_v29 = vpop.f32.mrf.mxu0 }
  0xb1   :  { %v296_v31 = vadd.f32 %v1401_v30, %v295_v29  ;;  %v1067_v29 = vld [vmem:[#allocation8 + $0x28] sm:$0xff] }
  0xb2   :  { %698 = vmatpush.bf16.msra.mxu2 %v1067_v29  ;;  %1183 = vmatpush.bf16.msra.mxu3 %v1067_v29 }
  0xb3   :  { %334 = vmatmul.bf16.gmra.mxu0 %v1038_v28  ;;  %v375_v34 = vmax.f32 %v296_v31, 0.0  ;;  %v1066_v31 = vld [vmem:[#allocation8 + $0x20] sm:$0xff] }
  0xb6   :  { %v355_v62 = vpop.f32.mrf.mxu3  ;;  %699 = vmatpush.bf16.msra.mxu2 %v1066_v31  ;;  %1184 = vmatpush.bf16.msra.mxu3 %v1066_v31 }
  0xb7   :  { %v356_v0 = vadd.f32 %v1401_v30, %v355_v62 }
  0xb8   :  { %v297_v32 = vpop.f32.mrf.mxu0 }
  0xb9   :  { %v298_v33 = vadd.f32 %v1401_v30, %v297_v32  ;;  %v399_v6 = vmax.f32 %v356_v0, 0.0 }
  0xbb   :  { %v376_v35 = vmax.f32 %v298_v33, 0.0 }
  0xbd   :  { %v407_v36 = vpack.c.bf16 %v376_v35, %v375_v34 }
  0xbe   :  { %v357_v3 = vpop.f32.mrf.mxu3 }
  0xbf   :  { %499 = vmatmul.bf16.vlgmr.msra.gmra.mxu1 %v407_v36  ;;  %v358_v7 = vadd.f32 %v1401_v30, %v357_v3 }
  0xc0   :  { %v300_v38 = vpop.f32.mrf.mxu0 }
  0xc1   :  { %v301_v39 = vadd.f32 %v1401_v30, %v300_v38  ;;  %v400_v9 = vmax.f32 %v358_v7, 0.0 }
  0xc3   :  { %339 = vmatmul.bf16.gmra.mxu0 %v1039_v37  ;;  %v377_v42 = vmax.f32 %v301_v39, 0.0  ;;  %v419_v10 = vpack.c.bf16 %v400_v9, %v399_v6  ;;  %v1065_v37 = vld [vmem:[#allocation8 + $0x18] sm:$0xff]  ;;  %v1432_v6 = vld [vmem:[%s1519_s4] ss:$0 sm:$0xff] }
  0xc4   :  { %700 = vmatpush.bf16.msra.mxu2 %v1065_v37  ;;  %1185 = vmatpush.bf16.msra.mxu3 %v1065_v37 }
  0xc5   :  { %559 = vmatmul.bf16.vlgmr.msrb.gmra.mxu3 %v419_v10 }
  0xc6   :  { %v360_v12 = vpop.f32.mrf.mxu3 }
  0xc7   :  { %v361_v14 = vadd.f32 %v1401_v30, %v360_v12 }
  0xc8   :  { %v302_v40 = vpop.f32.mrf.mxu0 }
  0xc9   :  { %v303_v41 = vadd.f32 %v1401_v30, %v302_v40  ;;  %v401_v21 = vmax.f32 %v361_v14, 0.0 }
  0xcb   :  { %v378_v43 = vmax.f32 %v303_v41, 0.0 }
  0xcd   :  { %v408_v44 = vpack.c.bf16 %v378_v43, %v377_v42 }
  0xce   :  { %v362_v17 = vpop.f32.mrf.mxu3 }
  0xcf   :  { %504 = vmatmul.bf16.gmra.mxu1 %v408_v44  ;;  %v363_v22 = vadd.f32 %v1401_v30, %v362_v17  ;;  %v1064_v44 = vld [vmem:[#allocation8 + $0x10] sm:$0xff] }
  0xd0   :  { %v305_v46 = vpop.f32.mrf.mxu0  ;;  %701 = vmatpush.bf16.msra.mxu2 %v1064_v44  ;;  %1186 = vmatpush.bf16.msra.mxu3 %v1064_v44 }
  0xd1   :  { %v306_v47 = vadd.f32 %v1401_v30, %v305_v46  ;;  %v402_v24 = vmax.f32 %v363_v22, 0.0 }
  0xd3   :  { %344 = vmatmul.bf16.gmra.mxu0 %v1040_v45  ;;  %v379_v50 = vmax.f32 %v306_v47, 0.0  ;;  %v420_v26 = vpack.c.bf16 %v402_v24, %v401_v21 }
  0xd5   :  { %564 = vmatmul.bf16.gmra.mxu3 %v420_v26 }
  0xd6   :  { %v365_v28 = vpop.f32.mrf.mxu3 }
  0xd7   :  { %v366_v33 = vadd.f32 %v1401_v30, %v365_v28 }
  0xd8   :  { %v307_v48 = vpop.f32.mrf.mxu0 }
  0xd9   :  { %v308_v49 = vadd.f32 %v1401_v30, %v307_v48  ;;  %v403_v40 = vmax.f32 %v366_v33, 0.0  ;;  %v1063_v48 = vld [vmem:[#allocation8 + $0x8] sm:$0xff] }
  0xda   :  { %702 = vmatpush.bf16.msra.mxu2 %v1063_v48  ;;  %1187 = vmatpush.bf16.msra.mxu3 %v1063_v48 }
  0xdb   :  { %v380_v51 = vmax.f32 %v308_v49, 0.0  ;;  %v1062_v49 = vld [vmem:[#allocation8] sm:$0xff] }
  0xdd   :  { %v409_v52 = vpack.c.bf16 %v380_v51, %v379_v50 }
  0xde   :  { %v367_v36 = vpop.f32.mrf.mxu3  ;;  %703 = vmatpush.bf16.msra.mxu2 %v1062_v49  ;;  %1188 = vmatpush.bf16.msra.mxu3 %v1062_v49 }
  0xdf   :  { %509 = vmatmul.bf16.gmra.mxu1 %v409_v52  ;;  %v368_v41 = vadd.f32 %v1401_v30, %v367_v36 }
  0xe0   :  { %v310_v54 = vpop.f32.mrf.mxu0 }
  0xe1   :  { %v311_v55 = vadd.f32 %v1401_v30, %v310_v54  ;;  %v404_v43 = vmax.f32 %v368_v41, 0.0 }
  0xe3   :  { %349 = vmatmul.bf16.gmra.mxu0 %v1041_v53  ;;  %v381_v58 = vmax.f32 %v311_v55, 0.0  ;;  %v421_v45 = vpack.c.bf16 %v404_v43, %v403_v40 }
  0xe5   :  { %569 = vmatmul.bf16.gmra.mxu3 %v421_v45 }
  0xe6   :  { %v370_v47 = vpop.f32.mrf.mxu3 }
  0xe7   :  { %v371_v51 = vadd.f32 %v1401_v30, %v370_v47 }
  0xe8   :  { %v312_v56 = vpop.f32.mrf.mxu0 }
  0xe9   :  { %v313_v57 = vadd.f32 %v1401_v30, %v312_v56 }
  0xeb   :  { %v382_v59 = vmax.f32 %v313_v57, 0.0  ;;  %v405_v57 = vmax.f32 %v371_v51, 0.0 }
  0xed   :  { %v410_v60 = vpack.c.bf16 %v382_v59, %v381_v58 }
  0xee   :  { %v372_v54 = vpop.f32.mrf.mxu3 }
  0xef   :  { %514 = vmatmul.bf16.gmra.mxu1 %v410_v60  ;;  %v373_v58 = vadd.f32 %v1401_v30, %v372_v54 }
  0xf0   :  { %v315_v61 = vpop.f32.mrf.mxu0 }
  0xf1   :  { %v316_v63 = vadd.f32 %v1401_v30, %v315_v61  ;;  %v406_v60 = vmax.f32 %v373_v58, 0.0 }
  0xf3   :  { %v383_v4 = vmax.f32 %v316_v63, 0.0  ;;  %v422_v61 = vpack.c.bf16 %v406_v60, %v405_v57 }
  0xf5   :  { %574 = vmatmul.bf16.gmra.mxu3 %v422_v61 }
  0xf8   :  { %v317_v1 = vpop.f32.mrf.mxu0 }
  0xf9   :  { %v318_v2 = vadd.f32 %v1401_v30, %v317_v1 }
  0xfb   :  { %v384_v5 = vmax.f32 %v318_v2, 0.0 }
  0xfd   :  { %v411_v8 = vpack.c.bf16 %v384_v5, %v383_v4 }
  0xff   :  { %519 = vmatmul.bf16.gmra.mxu1 %v411_v8 }
 0x100   :  { %v320_v11 = vpop.f32.mrf.mxu0 }
 0x101   :  { %v321_v13 = vadd.f32 %v1401_v30, %v320_v11 }
 0x103   :  { %v385_v19 = vmax.f32 %v321_v13, 0.0 }
 0x108   :  { %v322_v15 = vpop.f32.mrf.mxu0 }
 0x109   :  { %v323_v16 = vadd.f32 %v1401_v30, %v322_v15 }
 0x10b   :  { %v386_v20 = vmax.f32 %v323_v16, 0.0 }
 0x10d   :  { %v412_v23 = vpack.c.bf16 %v386_v20, %v385_v19 }
 0x10f   :  { %524 = vmatmul.bf16.gmra.mxu1 %v412_v23 }
 0x110   :  { %v325_v27 = vpop.f32.mrf.mxu0 }
 0x111   :  { %v326_v32 = vadd.f32 %v1401_v30, %v325_v27 }
 0x113   :  { %v387_v38 = vmax.f32 %v326_v32, 0.0 }
 0x118   :  { %v327_v34 = vpop.f32.mrf.mxu0 }
 0x119   :  { %v328_v35 = vadd.f32 %v1401_v30, %v327_v34 }
 0x11b   :  { %v388_v39 = vmax.f32 %v328_v35, 0.0 }
 0x11d   :  { %v413_v42 = vpack.c.bf16 %v388_v39, %v387_v38 }
 0x11f   :  { %529 = vmatmul.bf16.gmra.mxu1 %v413_v42 }
 0x120   :  { %v330_v46 = vpop.f32.mrf.mxu0 }
 0x121   :  { %v331_v50 = vadd.f32 %v1401_v30, %v330_v46 }
 0x123   :  { %v389_v55 = vmax.f32 %v331_v50, 0.0 }
 0x128   :  { %v332_v52 = vpop.f32.mrf.mxu0 }
 0x129   :  { %v333_v53 = vadd.f32 %v1401_v30, %v332_v52 }
 0x12b   :  { %v390_v56 = vmax.f32 %v333_v53, 0.0 }
 0x12d   :  { %v414_v59 = vpack.c.bf16 %v390_v56, %v389_v55 }
 0x12f   :  { %534 = vmatmul.bf16.gmra.mxu1 %v414_v59 }
 0x130   :  { %v335_v62 = vpop.f32.mrf.mxu0 }
 0x131   :  { %v336_v63 = vadd.f32 %v1401_v30, %v335_v62 }
 0x133   :  { %v391_v2 = vmax.f32 %v336_v63, 0.0 }
 0x138   :  { %v337_v0 = vpop.f32.mrf.mxu0 }
 0x139   :  { %v338_v1 = vadd.f32 %v1401_v30, %v337_v0 }
 0x13b   :  { %v392_v3 = vmax.f32 %v338_v1, 0.0 }
 0x13c   :  { %v500_v4 = vpop.f32.mrf.mxu1 }
 0x13d   :  { %v415_v5 = vpack.c.bf16 %v392_v3, %v391_v2  ;;  %v501_v8 = vadd.f32 %v1432_v6, %v500_v4 }
 0x13f   :  { %539 = vmatmul.bf16.gmra.mxu1 %v415_v5  ;;  %v580_v11 = vmax.f32 %v501_v8, 0.0 }
 0x140   :  { %v340_v7 = vpop.f32.mrf.mxu0 }
 0x141   :  { %v341_v12 = vadd.f32 %v1401_v30, %v340_v7 }
 0x143   :  { %v393_v17 = vmax.f32 %v341_v12, 0.0 }
 0x144   :  { %v502_v9 = vpop.f32.mrf.mxu1 }
 0x145   :  { %v503_v10 = vadd.f32 %v1432_v6, %v502_v9 }
 0x147   :  { %v581_v13 = vmax.f32 %v503_v10, 0.0 }
 0x148   :  { %v342_v14 = vpop.f32.mrf.mxu0  ;;  %v560_v58 = vpop.f32.mrf.mxu3 }
 0x149   :  { %v343_v15 = vadd.f32 %v1401_v30, %v342_v14  ;;  %v612_v16 = vpack.c.bf16 %v581_v13, %v580_v11  ;;  %v561_v63 = vadd.f32 %v1432_v6, %v560_v58  ;;  %v1470_v58 = vld [vmem:[%s1521_s6] ss:$0 sm:$0xff]  ;;  %s1333_s6 = smov [#allocation10]  }
 0x14a   :  { %s853_s23 = sshll.u32 %s1333_s6, 4  ;;  %s854_s23 = int_to_ptr.vmem [resolvable:$true] %s853_s23 }
 0x14b   :  { %v394_v18 = vmax.f32 %v343_v15, 0.0  ;;  %704 = vmatmul.bf16.vlgmr.msra.gmra.mxu2 %v612_v16  ;;  %v604_v2 = vmax.f32 %v561_v63, 0.0 }
 0x14c   :  { %v505_v19 = vpop.f32.mrf.mxu1 }
 0x14d   :  { %v416_v20 = vpack.c.bf16 %v394_v18, %v393_v17  ;;  %v506_v22 = vadd.f32 %v1432_v6, %v505_v19 }
 0x14f   :  { %544 = vmatmul.bf16.gmra.mxu1 %v416_v20  ;;  %v582_v25 = vmax.f32 %v506_v22, 0.0 }
 0x150   :  { %v345_v21 = vpop.f32.mrf.mxu0  ;;  %v562_v1 = vpop.f32.mrf.mxu3 }
 0x151   :  { %v346_v26 = vadd.f32 %v1401_v30, %v345_v21  ;;  %v563_v3 = vadd.f32 %v1432_v6, %v562_v1 }
 0x153   :  { %v395_v32 = vmax.f32 %v346_v26, 0.0  ;;  %v605_v4 = vmax.f32 %v563_v3, 0.0 }
 0x154   :  { %v507_v23 = vpop.f32.mrf.mxu1 }
 0x155   :  { %v508_v24 = vadd.f32 %v1432_v6, %v507_v23  ;;  %v624_v5 = vpack.c.bf16 %v605_v4, %v604_v2 }
 0x157   :  { %v583_v27 = vmax.f32 %v508_v24, 0.0  ;;  %764 = vmatmul.bf16.vlgmr.msra.gmra.mxu3 %v624_v5 }
 0x158   :  { %v347_v28 = vpop.f32.mrf.mxu0  ;;  %v565_v9 = vpop.f32.mrf.mxu3 }
 0x159   :  { %v348_v29 = vadd.f32 %v1401_v30, %v347_v28  ;;  %v613_v31 = vpack.c.bf16 %v583_v27, %v582_v25  ;;  %v566_v14 = vadd.f32 %v1432_v6, %v565_v9 }
 0x15b   :  { %v396_v33 = vmax.f32 %v348_v29, 0.0  ;;  %709 = vmatmul.bf16.gmra.mxu2 %v613_v31  ;;  %v606_v17 = vmax.f32 %v566_v14, 0.0 }
 0x15c   :  { %v510_v34 = vpop.f32.mrf.mxu1 }
 0x15d   :  { %v417_v35 = vpack.c.bf16 %v396_v33, %v395_v32  ;;  %v511_v37 = vadd.f32 %v1432_v6, %v510_v34 }
 0x15f   :  { %549 = vmatmul.bf16.gmra.mxu1 %v417_v35  ;;  %v584_v40 = vmax.f32 %v511_v37, 0.0 }
 0x160   :  { %v350_v36 = vpop.f32.mrf.mxu0  ;;  %v567_v16 = vpop.f32.mrf.mxu3 }
 0x161   :  { %v351_v41 = vadd.f32 %v1401_v30, %v350_v36  ;;  %v568_v18 = vadd.f32 %v1432_v6, %v567_v16 }
 0x163   :  { %v397_v46 = vmax.f32 %v351_v41, 0.0  ;;  %v607_v19 = vmax.f32 %v568_v18, 0.0 }
 0x164   :  { %v512_v38 = vpop.f32.mrf.mxu1 }
 0x165   :  { %v513_v39 = vadd.f32 %v1432_v6, %v512_v38  ;;  %v625_v20 = vpack.c.bf16 %v607_v19, %v606_v17 }
 0x167   :  { %v585_v42 = vmax.f32 %v513_v39, 0.0  ;;  %769 = vmatmul.bf16.gmra.mxu3 %v625_v20 }
 0x168   :  { %v352_v43 = vpop.f32.mrf.mxu0  ;;  %v570_v23 = vpop.f32.mrf.mxu3 }
 0x169   :  { %v353_v44 = vadd.f32 %v1401_v30, %v352_v43  ;;  %v614_v45 = vpack.c.bf16 %v585_v42, %v584_v40  ;;  %v571_v28 = vadd.f32 %v1432_v6, %v570_v23 }
 0x16b   :  { %v398_v47 = vmax.f32 %v353_v44, 0.0  ;;  %714 = vmatmul.bf16.gmra.mxu2 %v614_v45  ;;  %v608_v32 = vmax.f32 %v571_v28, 0.0 }
 0x16c   :  { %v515_v48 = vpop.f32.mrf.mxu1 }
 0x16d   :  { %v418_v49 = vpack.c.bf16 %v398_v47, %v397_v46  ;;  %v516_v50 = vadd.f32 %v1432_v6, %v515_v48 }
 0x16f   :  { %554 = vmatmul.bf16.gmra.mxu1 %v418_v49  ;;  %v586_v53 = vmax.f32 %v516_v50, 0.0 }
 0x170   :  { %v572_v31 = vpop.f32.mrf.mxu3 }
 0x171   :  { %v573_v33 = vadd.f32 %v1432_v6, %v572_v31 }
 0x173   :  { %v609_v34 = vmax.f32 %v573_v33, 0.0 }
 0x174   :  { %v517_v51 = vpop.f32.mrf.mxu1 }
 0x175   :  { %v518_v52 = vadd.f32 %v1432_v6, %v517_v51  ;;  %v626_v35 = vpack.c.bf16 %v609_v34, %v608_v32 }
 0x177   :  { %v587_v54 = vmax.f32 %v518_v52, 0.0  ;;  %774 = vmatmul.bf16.gmra.mxu3 %v626_v35 }
 0x178   :  { %v575_v38 = vpop.f32.mrf.mxu3 }
 0x179   :  { %v615_v55 = vpack.c.bf16 %v587_v54, %v586_v53  ;;  %v576_v43 = vadd.f32 %v1432_v6, %v575_v38 }
 0x17b   :  { %719 = vmatmul.bf16.gmra.mxu2 %v615_v55  ;;  %v610_v46 = vmax.f32 %v576_v43, 0.0 }
 0x17c   :  { %v520_v56 = vpop.f32.mrf.mxu1 }
 0x17d   :  { %v521_v57 = vadd.f32 %v1432_v6, %v520_v56 }
 0x17f   :  { %v588_v60 = vmax.f32 %v521_v57, 0.0 }
 0x180   :  { %v577_v45 = vpop.f32.mrf.mxu3 }
 0x181   :  { %v578_v47 = vadd.f32 %v1432_v6, %v577_v45 }
 0x183   :  { %v611_v48 = vmax.f32 %v578_v47, 0.0 }
 0x184   :  { %v522_v30 = vpop.f32.mrf.mxu1 }
 0x185   :  { %v523_v59 = vadd.f32 %v1432_v6, %v522_v30  ;;  %v627_v49 = vpack.c.bf16 %v611_v48, %v610_v46 }
 0x187   :  { %v589_v61 = vmax.f32 %v523_v59, 0.0  ;;  %779 = vmatmul.bf16.gmra.mxu3 %v627_v49 }
 0x189   :  { %v616_v62 = vpack.c.bf16 %v589_v61, %v588_v60 }
 0x18b   :  { %724 = vmatmul.bf16.gmra.mxu2 %v616_v62 }
 0x18c   :  { %v525_v0 = vpop.f32.mrf.mxu1 }
 0x18d   :  { %v526_v7 = vadd.f32 %v1432_v6, %v525_v0 }
 0x18f   :  { %v590_v11 = vmax.f32 %v526_v7, 0.0 }
 0x194   :  { %v527_v8 = vpop.f32.mrf.mxu1 }
 0x195   :  { %v528_v10 = vadd.f32 %v1432_v6, %v527_v8 }
 0x197   :  { %v591_v12 = vmax.f32 %v528_v10, 0.0 }
 0x199   :  { %v617_v13 = vpack.c.bf16 %v591_v12, %v590_v11 }
 0x19b   :  { %729 = vmatmul.bf16.gmra.mxu2 %v617_v13 }
 0x19c   :  { %v530_v15 = vpop.f32.mrf.mxu1 }
 0x19d   :  { %v531_v21 = vadd.f32 %v1432_v6, %v530_v15 }
 0x19f   :  { %v592_v25 = vmax.f32 %v531_v21, 0.0 }
 0x1a4   :  { %v532_v22 = vpop.f32.mrf.mxu1 }
 0x1a5   :  { %v533_v24 = vadd.f32 %v1432_v6, %v532_v22 }
 0x1a7   :  { %v593_v26 = vmax.f32 %v533_v24, 0.0 }
 0x1a9   :  { %v618_v27 = vpack.c.bf16 %v593_v26, %v592_v25 }
 0x1ab   :  { %734 = vmatmul.bf16.gmra.mxu2 %v618_v27 }
 0x1ac   :  { %v535_v29 = vpop.f32.mrf.mxu1 }
 0x1ad   :  { %v536_v36 = vadd.f32 %v1432_v6, %v535_v29 }
 0x1af   :  { %v594_v40 = vmax.f32 %v536_v36, 0.0 }
 0x1b4   :  { %v537_v37 = vpop.f32.mrf.mxu1 }
 0x1b5   :  { %v538_v39 = vadd.f32 %v1432_v6, %v537_v37 }
 0x1b7   :  { %v595_v41 = vmax.f32 %v538_v39, 0.0 }
 0x1b9   :  { %v619_v42 = vpack.c.bf16 %v595_v41, %v594_v40 }
 0x1bb   :  { %739 = vmatmul.bf16.gmra.mxu2 %v619_v42 }
 0x1bc   :  { %v540_v44 = vpop.f32.mrf.mxu1 }
 0x1bd   :  { %v541_v50 = vadd.f32 %v1432_v6, %v540_v44 }
 0x1bf   :  { %v596_v53 = vmax.f32 %v541_v50, 0.0 }
 0x1c4   :  { %v542_v51 = vpop.f32.mrf.mxu1 }
 0x1c5   :  { %v543_v52 = vadd.f32 %v1432_v6, %v542_v51 }
 0x1c7   :  { %v597_v54 = vmax.f32 %v543_v52, 0.0 }
 0x1c9   :  { %v620_v55 = vpack.c.bf16 %v597_v54, %v596_v53 }
 0x1cb   :  { %744 = vmatmul.bf16.gmra.mxu2 %v620_v55 }
 0x1cc   :  { %v545_v56 = vpop.f32.mrf.mxu1 }
 0x1cd   :  { %v546_v30 = vadd.f32 %v1432_v6, %v545_v56 }
 0x1ce   :  { %v705_v57 = vpop.f32.mrf.mxu2 }
 0x1cf   :  { %v598_v62 = vmax.f32 %v546_v30, 0.0  ;;  %v706_v63 = vadd.f32 %v1470_v58, %v705_v57 }
 0x1d4   :  { %v547_v59 = vpop.f32.mrf.mxu1 }
 0x1d5   :  { %v548_v60 = vadd.f32 %v1432_v6, %v547_v59 }
 0x1d6   :  { %v707_v61 = vpop.f32.mrf.mxu2 }
 0x1d7   :  { %v599_v0 = vmax.f32 %v548_v60, 0.0  ;;  %v708_v1 = vadd.f32 %v1470_v58, %v707_v61 }
 0x1d9   :  { %v1073_v2 = vpack.c.bf16 %v708_v1, %v706_v63  ;;  %v621_v3 = vpack.c.bf16 %v599_v0, %v598_v62 }
 0x1da   :  { %v765_v36 = vpop.f32.mrf.mxu3 }
 0x1db   :  { %1074 = vst [vmem:[#allocation10] sm:$0xff] %v1073_v2   ;;  %749 = vmatmul.bf16.gmra.mxu2 %v621_v3  ;;  %v766_v40 = vadd.f32 %v1470_v58, %v765_v36 }
 0x1dc   :  { %v550_v4 = vpop.f32.mrf.mxu1 }
 0x1dd   :  { %v551_v7 = vadd.f32 %v1432_v6, %v550_v4 }
 0x1de   :  { %v710_v5 = vpop.f32.mrf.mxu2 }
 0x1df   :  { %v600_v11 = vmax.f32 %v551_v7, 0.0  ;;  %v711_v12 = vadd.f32 %v1470_v58, %v710_v5 }
 0x1e2   :  { %v767_v42 = vpop.f32.mrf.mxu3 }
 0x1e3   :  { %v768_v43 = vadd.f32 %v1470_v58, %v767_v42 }
 0x1e4   :  { %v552_v8 = vpop.f32.mrf.mxu1 }
 0x1e5   :  { %v553_v9 = vadd.f32 %v1432_v6, %v552_v8  ;;  %v1133_v44 = vpack.c.bf16 %v768_v43, %v766_v40 }
 0x1e6   :  { %v712_v10 = vpop.f32.mrf.mxu2 }
 0x1e7   :  { %v601_v13 = vmax.f32 %v553_v9, 0.0  ;;  %v713_v14 = vadd.f32 %v1470_v58, %v712_v10  ;;  %1161 = vst [vmem:[#allocation10 + $0x60] sm:$0xff] %v1133_v44  }
 0x1e9   :  { %v1078_v15 = vpack.c.bf16 %v713_v14, %v711_v12  ;;  %v622_v16 = vpack.c.bf16 %v601_v13, %v600_v11 }
 0x1ea   :  { %v770_v46 = vpop.f32.mrf.mxu3 }
 0x1eb   :  { %1150 = vst [vmem:[#allocation10 + $0x8] sm:$0xff] %v1078_v15   ;;  %754 = vmatmul.bf16.gmra.mxu2 %v622_v16  ;;  %v771_v50 = vadd.f32 %v1470_v58, %v770_v46 }
 0x1ec   :  { %v555_v17 = vpop.f32.mrf.mxu1 }
 0x1ed   :  { %v556_v19 = vadd.f32 %v1432_v6, %v555_v17 }
 0x1ee   :  { %v715_v18 = vpop.f32.mrf.mxu2 }
 0x1ef   :  { %v602_v23 = vmax.f32 %v556_v19, 0.0  ;;  %v716_v24 = vadd.f32 %v1470_v58, %v715_v18 }
 0x1f2   :  { %v772_v52 = vpop.f32.mrf.mxu3 }
 0x1f3   :  { %v773_v53 = vadd.f32 %v1470_v58, %v772_v52 }
 0x1f4   :  { %v557_v20 = vpop.f32.mrf.mxu1 }
 0x1f5   :  { %v558_v21 = vadd.f32 %v1432_v6, %v557_v20  ;;  %v1138_v54 = vpack.c.bf16 %v773_v53, %v771_v50 }
 0x1f6   :  { %v717_v22 = vpop.f32.mrf.mxu2 }
 0x1f7   :  { %v603_v25 = vmax.f32 %v558_v21, 0.0  ;;  %v718_v26 = vadd.f32 %v1470_v58, %v717_v22  ;;  %1162 = vst [vmem:[#allocation10 + $0x68] sm:$0xff] %v1138_v54  }
 0x1f9   :  { %v1083_v27 = vpack.c.bf16 %v718_v26, %v716_v24  ;;  %v623_v28 = vpack.c.bf16 %v603_v25, %v602_v23 }
 0x1fa   :  { %v775_v56 = vpop.f32.mrf.mxu3 }
 0x1fb   :  { %1151 = vst [vmem:[#allocation10 + $0x10] sm:$0xff] %v1083_v27   ;;  %759 = vmatmul.bf16.gmra.mxu2 %v623_v28  ;;  %v776_v60 = vadd.f32 %v1470_v58, %v775_v56 }
 0x1fe   :  { %v720_v29 = vpop.f32.mrf.mxu2 }
 0x1ff   :  { %v721_v32 = vadd.f32 %v1470_v58, %v720_v29 }
 0x202   :  { %v777_v62 = vpop.f32.mrf.mxu3 }
 0x203   :  { %v778_v63 = vadd.f32 %v1470_v58, %v777_v62 }
 0x205   :  { %v1143_v0 = vpack.c.bf16 %v778_v63, %v776_v60 }
 0x206   :  { %v722_v31 = vpop.f32.mrf.mxu2 }
 0x207   :  { %v723_v33 = vadd.f32 %v1470_v58, %v722_v31  ;;  %1163 = vst [vmem:[#allocation10 + $0x70] sm:$0xff] %v1143_v0  }
 0x209   :  { %v1088_v34 = vpack.c.bf16 %v723_v33, %v721_v32 }
 0x20a   :  { %v780_v2 = vpop.f32.mrf.mxu3 }
 0x20b   :  { %1152 = vst [vmem:[#allocation10 + $0x18] sm:$0xff] %v1088_v34   ;;  %v781_v7 = vadd.f32 %v1470_v58, %v780_v2 }
 0x20e   :  { %v725_v6 = vpop.f32.mrf.mxu2 }
 0x20f   :  { %v726_v37 = vadd.f32 %v1470_v58, %v725_v6 }
 0x212   :  { %v782_v9 = vpop.f32.mrf.mxu3 }
 0x213   :  { %v783_v10 = vadd.f32 %v1470_v58, %v782_v9 }
 0x215   :  { %v1148_v11 = vpack.c.bf16 %v783_v10, %v781_v7 }
 0x216   :  { %v727_v35 = vpop.f32.mrf.mxu2 }
 0x217   :  { %v728_v38 = vadd.f32 %v1470_v58, %v727_v35  ;;  %1164 = vst [vmem:[#allocation10 + $0x78] sm:$0xff] %v1148_v11  }
 0x219   :  { %v1093_v39 = vpack.c.bf16 %v728_v38, %v726_v37 }
 0x21b   :  { %1153 = vst [vmem:[#allocation10 + $0x20] sm:$0xff] %v1093_v39  }
 0x21e   :  { %v730_v41 = vpop.f32.mrf.mxu2 }
 0x21f   :  { %v731_v47 = vadd.f32 %v1470_v58, %v730_v41 }
 0x226   :  { %v732_v45 = vpop.f32.mrf.mxu2 }
 0x227   :  { %v733_v48 = vadd.f32 %v1470_v58, %v732_v45 }
 0x229   :  { %v1098_v49 = vpack.c.bf16 %v733_v48, %v731_v47 }
 0x22b   :  { %1154 = vst [vmem:[#allocation10 + $0x28] sm:$0xff] %v1098_v49  }
 0x22e   :  { %v735_v51 = vpop.f32.mrf.mxu2 }
 0x22f   :  { %v736_v57 = vadd.f32 %v1470_v58, %v735_v51 }
 0x236   :  { %v737_v55 = vpop.f32.mrf.mxu2 }
 0x237   :  { %v738_v30 = vadd.f32 %v1470_v58, %v737_v55 }
 0x239   :  { %v1103_v59 = vpack.c.bf16 %v738_v30, %v736_v57 }
 0x23b   :  { %1155 = vst [vmem:[#allocation10 + $0x30] sm:$0xff] %v1103_v59  }
 0x23e   :  { %v740_v61 = vpop.f32.mrf.mxu2 }
 0x23f   :  { %v741_v3 = vadd.f32 %v1470_v58, %v740_v61 }
 0x246   :  { %v742_v1 = vpop.f32.mrf.mxu2 }
 0x247   :  { %v743_v4 = vadd.f32 %v1470_v58, %v742_v1 }
 0x249   :  { %v1108_v5 = vpack.c.bf16 %v743_v4, %v741_v3 }
 0x24b   :  { %1156 = vst [vmem:[#allocation10 + $0x38] sm:$0xff] %v1108_v5  }
 0x24e   :  { %v745_v8 = vpop.f32.mrf.mxu2 }
 0x24f   :  { %v746_v13 = vadd.f32 %v1470_v58, %v745_v8 }
 0x256   :  { %v747_v12 = vpop.f32.mrf.mxu2 }
 0x257   :  { %v748_v14 = vadd.f32 %v1470_v58, %v747_v12 }
 0x259   :  { %v1113_v15 = vpack.c.bf16 %v748_v14, %v746_v13 }
 0x25b   :  { %1157 = vst [vmem:[#allocation10 + $0x40] sm:$0xff] %v1113_v15  }
 0x25e   :  { %v750_v16 = vpop.f32.mrf.mxu2 }
 0x25f   :  { %v751_v18 = vadd.f32 %v1470_v58, %v750_v16 }
 0x266   :  { %v752_v17 = vpop.f32.mrf.mxu2 }
 0x267   :  { %v753_v19 = vadd.f32 %v1470_v58, %v752_v17 }
 0x269   :  { %v1118_v20 = vpack.c.bf16 %v753_v19, %v751_v18 }
 0x26b   :  { %1158 = vst [vmem:[#allocation10 + $0x48] sm:$0xff] %v1118_v20  }
 0x26e   :  { %v755_v21 = vpop.f32.mrf.mxu2 }
 0x26f   :  { %v756_v23 = vadd.f32 %v1470_v58, %v755_v21 }
 0x276   :  { %v757_v22 = vpop.f32.mrf.mxu2 }
 0x277   :  { %v758_v24 = vadd.f32 %v1470_v58, %v757_v22 }
 0x279   :  { %v1123_v25 = vpack.c.bf16 %v758_v24, %v756_v23 }
 0x27b   :  { %1159 = vst [vmem:[#allocation10 + $0x50] sm:$0xff] %v1123_v25  }
 0x27e   :  { %v760_v26 = vpop.f32.mrf.mxu2 }
 0x27f   :  { %v761_v28 = vadd.f32 %v1470_v58, %v760_v26 }
 0x286   :  { %v762_v27 = vpop.f32.mrf.mxu2 }
 0x287   :  { %v763_v29 = vadd.f32 %v1470_v58, %v762_v27 }
 0x289   :  { %v1128_v31 = vpack.c.bf16 %v763_v29, %v761_v28 }
 0x28b   :  { %1160 = vst [vmem:[#allocation10 + $0x58] sm:$0xff] %v1128_v31  }
 0x28c   :  { %861 = dma.vmem_to_hbm [thread:$0]  %s854_s23, 2048, %s856_s26, [#allocation4], %s1328_s9, %s1328_s9, %s1329_s10  }
 0x28d   :  { %1325 = dma.done.wait [#allocation4], 2048  }
 0x28e   :  { %1326 = vsyncadd [#allocation4], 4294965248 }
 0x28f   :  { %866 = vsyncpa [#allocation3], 1 }
 0x290   :  { %867 = vsyncpa [#allocation6], 1 }
 0x291   :  { %868 = vsyncpa [#allocation9], 1 }
 0x292   :  { %869 = vsyncpa [#allocation4], 1 }

</bundles_post_ra>
